<compile_context>
chip_gen: v7x
topology: tpu7x:2x2x1
jax: 0.10.0
libtpu: 0.0.40
codegen_flags: <defaults>
</compile_context>

<pallas_src>
import jax
import jax.numpy as jnp
from jax.experimental import pallas as pl
from jax.experimental.pallas import tpu as pltpu


def basic_block_kernel(x_ref, w1_ref, b1_ref, w2_ref, b2_ref, out_ref,
                       xpad, ypad):
    # x_ref  : (BT, H, WC)   input block, lane-dense in (W, C), f32
    # w1_ref : (3, WC, WC)   conv1 weight split by H-tap, BN1 scale folded, bf16
    # b1_ref : (1, WC)       BN1 bias (per (w, cout) lane), f32
    # w2_ref : (3, WC, WC)   conv2 weight split by H-tap, BN2 scale folded, bf16
    # b2_ref : (1, WC)       BN2 bias, f32
    # out_ref: (BT*H, WC)    lane-dense 2D output slab, f32
    # xpad   : (BT, H+2, WC) f32 scratch, zero-bordered padded input
    # ypad   : (BT, H+2, WC) f32 scratch, zero-bordered padded conv1 output
    bt, h, wc = x_ref.shape
    m = bt * h

    # Zero the H-padding border rows (2 rows per image; interiors are fully
    # overwritten below, so this is all the "padding" work there is).
    zrow = jnp.zeros((bt, 1, wc), jnp.float32)
    xpad[:, 0:1, :] = zrow
    xpad[:, h + 1:h + 2, :] = zrow
    ypad[:, 0:1, :] = zrow
    ypad[:, h + 1:h + 2, :] = zrow

    # Single read of the input block: residual path + center tap + padded copy.
    x = x_ref[...]                      # (bt, h, wc) f32
    xf = x.reshape(m, wc)               # layout-free (h % 8 == 0, wc == 128)
    xpad[:, 1:h + 1, :] = x

    def conv3x3(pad_ref, mid, w_ref):
        # Three accumulated MXU matmuls.  The W-direction taps (incl. zero
        # W-padding) live inside each (WC, WC) band; the H-direction taps are
        # the three row-shifted views of the zero-bordered scratch.  The
        # center tap uses the value already in registers (no reload).
        acc = jnp.dot(mid.astype(jnp.bfloat16), w_ref[1],
                      preferred_element_type=jnp.float32)
        acc = acc + jnp.dot(
            pad_ref[:, 0:h, :].reshape(m, wc).astype(jnp.bfloat16),
            w_ref[0], preferred_element_type=jnp.float32)
        acc = acc + jnp.dot(
            pad_ref[:, 2:h + 2, :].reshape(m, wc).astype(jnp.bfloat16),
            w_ref[2], preferred_element_type=jnp.float32)
        return acc                      # (m, wc) f32

    # conv1 + bn1 + relu
    y = jnp.maximum(conv3x3(xpad, xf, w1_ref) + b1_ref[...], 0.0)
    ypad[:, 1:h + 1, :] = y.reshape(bt, h, wc)

    # conv2 + bn2 + residual + relu; full 128-lane unmasked 2D store.
    z = conv3x3(ypad, y, w2_ref) + b2_ref[...] + xf
    out_ref[...] = jnp.maximum(z, 0.0)


def _banded_conv_weight(w_hwio, scale, width):
    """Fold a 3x3 conv (zero W-padding, stride 1) plus a per-output-channel
    scale into three (width*Cin, width*Cout) matmul bands, one per H-tap,
    acting on rows flattened as (W, C) lanes."""
    _, _, cin, cout = w_hwio.shape
    w_eff = (w_hwio * scale).astype(jnp.float32)            # BN scale folded in
    w_in = jnp.arange(width)[:, None]                       # (W, 1)
    w_out = jnp.arange(width)[None, :]                      # (1, W)
    dx = w_in - w_out + 1                                   # kw = win - wout + 1
    valid = (dx >= 0) & (dx <= 2)
    taps = w_eff[:, jnp.clip(dx, 0, 2)]                     # (3, Win, Wout, Cin, Cout)
    taps = jnp.where(valid[None, :, :, None, None], taps, 0.0)
    big = jnp.transpose(taps, (0, 1, 3, 2, 4))              # (3, Win, Cin, Wout, Cout)
    return big.reshape(3, width * cin, width * cout)


def _pick_b_tile(n, h, wc, target_rows=512, vmem_budget=20 << 20):
    """Batch tile: fill the MXU M dim / amortize per-step pipeline overhead
    (~512 rows of 128 lanes per step) while keeping the per-step VMEM
    estimate under budget (v5e 16 MiB scoped default, v7x 64 MiB physical)."""
    def step_vmem(bt):
        io_blocks = 2 * 2 * bt * h * wc * 4            # in + out, double-buffered
        scratch = 2 * bt * (h + 2) * wc * 4            # xpad + ypad (f32)
        weights = 2 * 3 * wc * wc * 2 + 2 * wc * 4     # bf16 weights + f32 biases
        return io_blocks + scratch + weights
    divisors = [d for d in range(1, n + 1) if n % d == 0]
    fitting = [d for d in divisors if step_vmem(d) <= vmem_budget] or [1]
    for d in fitting:
        if d * h >= target_rows:
            return d            # smallest tile that already fills the MXU M dim
    return fitting[-1]          # otherwise the biggest tile that fits


def basic_block_forward(x_nhwc, w1, g1, be1, m1, v1, w2, g2, be2, m2, v2,
                        eps=1e-5, b_tile=None):
    """x_nhwc: (N, H, W, C) f32; conv weights HWIO (3,3,Cin,Cout); BN per-chan."""
    N, H, W, Cin = x_nhwc.shape
    Cout = w1.shape[-1]
    assert Cin == Cout, "identity residual requires inplanes == planes"
    WC = W * Cout

    # Fold inference-mode BN into the conv weights (scale) + one bias row.
    inv1 = g1 / jnp.sqrt(v1 + eps)
    inv2 = g2 / jnp.sqrt(v2 + eps)
    w1b = _banded_conv_weight(w1, inv1, W).astype(jnp.bfloat16)  # (3, WC, WC)
    w2b = _banded_conv_weight(w2, inv2, W).astype(jnp.bfloat16)  # (3, WC, WC)
    b1 = jnp.tile(be1 - m1 * inv1, W).reshape(1, WC)             # (w, c) lanes
    b2 = jnp.tile(be2 - m2 * inv2, W).reshape(1, WC)

    # Lane-dense activations, read ONCE (no HBM-side padding, no second copy).
    x2 = x_nhwc.reshape(N, H, WC)

    if b_tile is None:
        b_tile = _pick_b_tile(N, H, WC)
    assert N % b_tile == 0
    grid = (N // b_tile,)

    out = pl.pallas_call(
        basic_block_kernel,
        out_shape=jax.ShapeDtypeStruct((N * H, WC), jnp.float32),
        grid_spec=pltpu.PrefetchScalarGridSpec(
            num_scalar_prefetch=0,
            grid=grid,
            in_specs=[
                pl.BlockSpec((b_tile, H, WC), lambda n: (n, 0, 0)),
                pl.BlockSpec((3, WC, WC), lambda n: (0, 0, 0)),
                pl.BlockSpec((1, WC), lambda n: (0, 0)),
                pl.BlockSpec((3, WC, WC), lambda n: (0, 0, 0)),
                pl.BlockSpec((1, WC), lambda n: (0, 0)),
            ],
            out_specs=pl.BlockSpec((b_tile * H, WC), lambda n: (n, 0)),
            scratch_shapes=[
                pltpu.VMEM((b_tile, H + 2, WC), jnp.float32),   # xpad
                pltpu.VMEM((b_tile, H + 2, WC), jnp.float32),   # ypad
            ],
        ),
        compiler_params=pltpu.CompilerParams(
            dimension_semantics=("parallel",),
            vmem_limit_bytes=32 << 20),
    )(x2, w1b, b1, w2b, b2)

    return out.reshape(N, H, W, Cout)


def basic_block_reference(x_nhwc, w1, g1, be1, m1, v1, w2, g2, be2, m2, v2,
                          eps=1e-5):
    dn = ('NHWC', 'HWIO', 'NHWC')
    s1 = g1 / jnp.sqrt(v1 + eps)
    b1 = be1 - m1 * s1
    s2 = g2 / jnp.sqrt(v2 + eps)
    b2 = be2 - m2 * s2
    y = jax.lax.conv_general_dilated(x_nhwc, w1, (1, 1), ((1, 1), (1, 1)),
                                     dimension_numbers=dn)
    y = jnp.maximum(y * s1 + b1, 0.0)
    y = jax.lax.conv_general_dilated(y, w2, (1, 1), ((1, 1), (1, 1)),
                                     dimension_numbers=dn)
    y = y * s2 + b2 + x_nhwc
    return jnp.maximum(y, 0.0)


if __name__ == "__main__":
    # BasicBlock(inplanes=8, planes=8, stride=1, downsample=None)
    # W * C = 16 * 8 = 128 -> exactly one lane-dense vreg row per image row.
    N, C, H, W = 2, 8, 16, 16
    key = jax.random.PRNGKey(0)
    kx, k1, k2, kg1, kb1, kg2, kb2, km1, kv1, km2, kv2 = jax.random.split(key, 11)

    # PyTorch-style NCHW input -> NHWC for the kernel.
    x_nchw = jax.random.normal(kx, (N, C, H, W), jnp.float32)
    x_nhwc = jnp.transpose(x_nchw, (0, 2, 3, 1))

    # Conv weights: PyTorch OIHW -> HWIO.
    w1_oihw = jax.random.normal(k1, (C, C, 3, 3), jnp.float32) * 0.1
    w2_oihw = jax.random.normal(k2, (C, C, 3, 3), jnp.float32) * 0.1
    w1 = jnp.transpose(w1_oihw, (2, 3, 1, 0))
    w2 = jnp.transpose(w2_oihw, (2, 3, 1, 0))

    # BatchNorm parameters (deterministic, inference mode).
    g1 = 1.0 + 0.1 * jax.random.normal(kg1, (C,), jnp.float32)
    be1 = 0.1 * jax.random.normal(kb1, (C,), jnp.float32)
    m1 = 0.1 * jax.random.normal(km1, (C,), jnp.float32)
    v1 = 1.0 + 0.1 * jax.random.uniform(kv1, (C,), jnp.float32)
    g2 = 1.0 + 0.1 * jax.random.normal(kg2, (C,), jnp.float32)
    be2 = 0.1 * jax.random.normal(kb2, (C,), jnp.float32)
    m2 = 0.1 * jax.random.normal(km2, (C,), jnp.float32)
    v2 = 1.0 + 0.1 * jax.random.uniform(kv2, (C,), jnp.float32)

    out = basic_block_forward(x_nhwc, w1, g1, be1, m1, v1, w2, g2, be2, m2, v2)
    out = jax.block_until_ready(out)

    ref = basic_block_reference(x_nhwc, w1, g1, be1, m1, v1,
                                w2, g2, be2, m2, v2)
    ref = jax.block_until_ready(ref)

    assert out.shape == (N, H, W, C)
    # bf16 matmul operands (f32 accumulation) -> loosened tolerance.
    assert jnp.allclose(out, ref, atol=3e-2, rtol=3e-2), (
        float(jnp.max(jnp.abs(out - ref))))
    print("KERNEL_OK")
</pallas_src>

<mosaic_0001>
module attributes {stable_mosaic.version = 11 : i64} {
  func.func @basic_block_kernel(%arg0: i32, %arg1: memref<2x16x128xf32, #tpu.memory_space<vmem>>, %arg2: memref<3x128x128xbf16, #tpu.memory_space<vmem>>, %arg3: memref<1x128xf32, #tpu.memory_space<vmem>>, %arg4: memref<3x128x128xbf16, #tpu.memory_space<vmem>>, %arg5: memref<1x128xf32, #tpu.memory_space<vmem>>, %arg6: memref<32x128xf32, #tpu.memory_space<vmem>>, %arg7: memref<2x18x128xf32, #tpu.memory_space<vmem>>, %arg8: memref<2x18x128xf32, #tpu.memory_space<vmem>>) attributes {dimension_semantics = [#tpu.dimension_semantics<parallel>], iteration_bounds = array<i64: 1>, scalar_prefetch = 0 : i64, scratch_operands = 2 : i64, tpu.core_type = #tpu.core_type<tc>, window_params = [{transform_indices = @transform_0, window_bounds = array<i64: 2, 16, 128>}, {pipeline_mode = #tpu.pipeline_mode<synchronous>, transform_indices = @transform_1, window_bounds = array<i64: 3, 128, 128>}, {pipeline_mode = #tpu.pipeline_mode<synchronous>, transform_indices = @transform_2, window_bounds = array<i64: 1, 128>}, {pipeline_mode = #tpu.pipeline_mode<synchronous>, transform_indices = @transform_3, window_bounds = array<i64: 3, 128, 128>}, {pipeline_mode = #tpu.pipeline_mode<synchronous>, transform_indices = @transform_4, window_bounds = array<i64: 1, 128>}, {transform_indices = @transform_5, window_bounds = array<i64: 32, 128>}]} {
    %cst = arith.constant 0.000000e+00 : f32
    %0 = vector.broadcast %cst : f32 to vector<2x1x128xf32>
    %c0 = arith.constant 0 : index
    %c0_0 = arith.constant 0 : index
    %c0_1 = arith.constant 0 : index
    %1 = vector.load %arg7[%c0, %c0_0, %c0_1] : memref<2x18x128xf32, #tpu.memory_space<vmem>>, vector<2x1x128xf32>
    tpu.vector_store %arg7[%c0, %c0_0, %c0_1], %0 {strides = array<i32>} : memref<2x18x128xf32, #tpu.memory_space<vmem>>, vector<2x1x128xf32>,
    %c0_2 = arith.constant 0 : index
    %c17 = arith.constant 17 : index
    %c0_3 = arith.constant 0 : index
    %2 = vector.load %arg7[%c0_2, %c17, %c0_3] : memref<2x18x128xf32, #tpu.memory_space<vmem>>, vector<2x1x128xf32>
    tpu.vector_store %arg7[%c0_2, %c17, %c0_3], %0 {strides = array<i32>} : memref<2x18x128xf32, #tpu.memory_space<vmem>>, vector<2x1x128xf32>,
    %c0_4 = arith.constant 0 : index
    %c0_5 = arith.constant 0 : index
    %c0_6 = arith.constant 0 : index
    %3 = vector.load %arg8[%c0_4, %c0_5, %c0_6] : memref<2x18x128xf32, #tpu.memory_space<vmem>>, vector<2x1x128xf32>
    tpu.vector_store %arg8[%c0_4, %c0_5, %c0_6], %0 {strides = array<i32>} : memref<2x18x128xf32, #tpu.memory_space<vmem>>, vector<2x1x128xf32>,
    %c0_7 = arith.constant 0 : index
    %c17_8 = arith.constant 17 : index
    %c0_9 = arith.constant 0 : index
    %4 = vector.load %arg8[%c0_7, %c17_8, %c0_9] : memref<2x18x128xf32, #tpu.memory_space<vmem>>, vector<2x1x128xf32>
    tpu.vector_store %arg8[%c0_7, %c17_8, %c0_9], %0 {strides = array<i32>} : memref<2x18x128xf32, #tpu.memory_space<vmem>>, vector<2x1x128xf32>,
    %c0_10 = arith.constant 0 : index
    %c0_11 = arith.constant 0 : index
    %c0_12 = arith.constant 0 : index
    %5 = vector.load %arg1[%c0_10, %c0_11, %c0_12] : memref<2x16x128xf32, #tpu.memory_space<vmem>>, vector<2x16x128xf32>
    %6 = vector.shape_cast %5 : vector<2x16x128xf32> to vector<32x128xf32>
    %c0_13 = arith.constant 0 : index
    %c1 = arith.constant 1 : index
    %c0_14 = arith.constant 0 : index
    %7 = vector.load %arg7[%c0_13, %c1, %c0_14] : memref<2x18x128xf32, #tpu.memory_space<vmem>>, vector<2x16x128xf32>
    tpu.vector_store %arg7[%c0_13, %c1, %c0_14], %5 {strides = array<i32>} : memref<2x18x128xf32, #tpu.memory_space<vmem>>, vector<2x16x128xf32>,
    %8 = arith.truncf %6 : vector<32x128xf32> to vector<32x128xbf16>
    %c1_15 = arith.constant 1 : index
    %c0_16 = arith.constant 0 : index
    %c0_17 = arith.constant 0 : index
    %9 = vector.load %arg2[%c1_15, %c0_16, %c0_17] : memref<3x128x128xbf16, #tpu.memory_space<vmem>>, vector<1x128x128xbf16>
    %10 = vector.shape_cast %9 : vector<1x128x128xbf16> to vector<128x128xbf16>
    %cst_18 = arith.constant dense<0.000000e+00> : vector<32x128xf32>
    %11 = tpu.matmul %8, %10, %cst_18 {dimension_numbers = #tpu.dot_dimension_numbers<[1], [0], [0], [1], [0, 0, 1, 1], [], []>} : vector<32x128xbf16>, vector<128x128xbf16>, vector<32x128xf32> -> vector<32x128xf32>
    %c0_19 = arith.constant 0 : index
    %c0_20 = arith.constant 0 : index
    %c0_21 = arith.constant 0 : index
    %12 = vector.load %arg7[%c0_19, %c0_20, %c0_21] : memref<2x18x128xf32, #tpu.memory_space<vmem>>, vector<2x16x128xf32>
    %13 = vector.shape_cast %12 : vector<2x16x128xf32> to vector<32x128xf32>
    %14 = arith.truncf %13 : vector<32x128xf32> to vector<32x128xbf16>
    %c0_22 = arith.constant 0 : index
    %c0_23 = arith.constant 0 : index
    %c0_24 = arith.constant 0 : index
    %15 = vector.load %arg2[%c0_22, %c0_23, %c0_24] : memref<3x128x128xbf16, #tpu.memory_space<vmem>>, vector<1x128x128xbf16>
    %16 = vector.shape_cast %15 : vector<1x128x128xbf16> to vector<128x128xbf16>
    %cst_25 = arith.constant dense<0.000000e+00> : vector<32x128xf32>
    %17 = tpu.matmul %14, %16, %cst_25 {dimension_numbers = #tpu.dot_dimension_numbers<[1], [0], [0], [1], [0, 0, 1, 1], [], []>} : vector<32x128xbf16>, vector<128x128xbf16>, vector<32x128xf32> -> vector<32x128xf32>
    %18 = arith.addf %11, %17 : vector<32x128xf32>
    %c0_26 = arith.constant 0 : index
    %c2 = arith.constant 2 : index
    %c0_27 = arith.constant 0 : index
    %19 = vector.load %arg7[%c0_26, %c2, %c0_27] : memref<2x18x128xf32, #tpu.memory_space<vmem>>, vector<2x16x128xf32>
    %20 = vector.shape_cast %19 : vector<2x16x128xf32> to vector<32x128xf32>
    %21 = arith.truncf %20 : vector<32x128xf32> to vector<32x128xbf16>
    %c2_28 = arith.constant 2 : index
    %c0_29 = arith.constant 0 : index
    %c0_30 = arith.constant 0 : index
    %22 = vector.load %arg2[%c2_28, %c0_29, %c0_30] : memref<3x128x128xbf16, #tpu.memory_space<vmem>>, vector<1x128x128xbf16>
    %23 = vector.shape_cast %22 : vector<1x128x128xbf16> to vector<128x128xbf16>
    %cst_31 = arith.constant dense<0.000000e+00> : vector<32x128xf32>
    %24 = tpu.matmul %21, %23, %cst_31 {dimension_numbers = #tpu.dot_dimension_numbers<[1], [0], [0], [1], [0, 0, 1, 1], [], []>} : vector<32x128xbf16>, vector<128x128xbf16>, vector<32x128xf32> -> vector<32x128xf32>
    %25 = arith.addf %18, %24 : vector<32x128xf32>
    %c0_32 = arith.constant 0 : index
    %c0_33 = arith.constant 0 : index
    %26 = vector.load %arg3[%c0_32, %c0_33] : memref<1x128xf32, #tpu.memory_space<vmem>>, vector<1x128xf32>
    %27 = vector.broadcast %26 : vector<1x128xf32> to vector<32x128xf32>
    %28 = arith.addf %25, %27 : vector<32x128xf32>
    %cst_34 = arith.constant 0.000000e+00 : f32
    %29 = vector.broadcast %cst_34 : f32 to vector<32x128xf32>
    %30 = arith.maximumf %28, %29 : vector<32x128xf32>
    %31 = vector.shape_cast %30 : vector<32x128xf32> to vector<2x16x128xf32>
    %c0_35 = arith.constant 0 : index
    %c1_36 = arith.constant 1 : index
    %c0_37 = arith.constant 0 : index
    %32 = vector.load %arg8[%c0_35, %c1_36, %c0_37] : memref<2x18x128xf32, #tpu.memory_space<vmem>>, vector<2x16x128xf32>
    tpu.vector_store %arg8[%c0_35, %c1_36, %c0_37], %31 {strides = array<i32>} : memref<2x18x128xf32, #tpu.memory_space<vmem>>, vector<2x16x128xf32>,
    %33 = arith.truncf %30 : vector<32x128xf32> to vector<32x128xbf16>
    %c1_38 = arith.constant 1 : index
    %c0_39 = arith.constant 0 : index
    %c0_40 = arith.constant 0 : index
    %34 = vector.load %arg4[%c1_38, %c0_39, %c0_40] : memref<3x128x128xbf16, #tpu.memory_space<vmem>>, vector<1x128x128xbf16>
    %35 = vector.shape_cast %34 : vector<1x128x128xbf16> to vector<128x128xbf16>
    %cst_41 = arith.constant dense<0.000000e+00> : vector<32x128xf32>
    %36 = tpu.matmul %33, %35, %cst_41 {dimension_numbers = #tpu.dot_dimension_numbers<[1], [0], [0], [1], [0, 0, 1, 1], [], []>} : vector<32x128xbf16>, vector<128x128xbf16>, vector<32x128xf32> -> vector<32x128xf32>
    %c0_42 = arith.constant 0 : index
    %c0_43 = arith.constant 0 : index
    %c0_44 = arith.constant 0 : index
    %37 = vector.load %arg8[%c0_42, %c0_43, %c0_44] : memref<2x18x128xf32, #tpu.memory_space<vmem>>, vector<2x16x128xf32>
    %38 = vector.shape_cast %37 : vector<2x16x128xf32> to vector<32x128xf32>
    %39 = arith.truncf %38 : vector<32x128xf32> to vector<32x128xbf16>
    %c0_45 = arith.constant 0 : index
    %c0_46 = arith.constant 0 : index
    %c0_47 = arith.constant 0 : index
    %40 = vector.load %arg4[%c0_45, %c0_46, %c0_47] : memref<3x128x128xbf16, #tpu.memory_space<vmem>>, vector<1x128x128xbf16>
    %41 = vector.shape_cast %40 : vector<1x128x128xbf16> to vector<128x128xbf16>
    %cst_48 = arith.constant dense<0.000000e+00> : vector<32x128xf32>
    %42 = tpu.matmul %39, %41, %cst_48 {dimension_numbers = #tpu.dot_dimension_numbers<[1], [0], [0], [1], [0, 0, 1, 1], [], []>} : vector<32x128xbf16>, vector<128x128xbf16>, vector<32x128xf32> -> vector<32x128xf32>
    %43 = arith.addf %36, %42 : vector<32x128xf32>
    %c0_49 = arith.constant 0 : index
    %c2_50 = arith.constant 2 : index
    %c0_51 = arith.constant 0 : index
    %44 = vector.load %arg8[%c0_49, %c2_50, %c0_51] : memref<2x18x128xf32, #tpu.memory_space<vmem>>, vector<2x16x128xf32>
    %45 = vector.shape_cast %44 : vector<2x16x128xf32> to vector<32x128xf32>
    %46 = arith.truncf %45 : vector<32x128xf32> to vector<32x128xbf16>
    %c2_52 = arith.constant 2 : index
    %c0_53 = arith.constant 0 : index
    %c0_54 = arith.constant 0 : index
    %47 = vector.load %arg4[%c2_52, %c0_53, %c0_54] : memref<3x128x128xbf16, #tpu.memory_space<vmem>>, vector<1x128x128xbf16>
    %48 = vector.shape_cast %47 : vector<1x128x128xbf16> to vector<128x128xbf16>
    %cst_55 = arith.constant dense<0.000000e+00> : vector<32x128xf32>
    %49 = tpu.matmul %46, %48, %cst_55 {dimension_numbers = #tpu.dot_dimension_numbers<[1], [0], [0], [1], [0, 0, 1, 1], [], []>} : vector<32x128xbf16>, vector<128x128xbf16>, vector<32x128xf32> -> vector<32x128xf32>
    %50 = arith.addf %43, %49 : vector<32x128xf32>
    %c0_56 = arith.constant 0 : index
    %c0_57 = arith.constant 0 : index
    %51 = vector.load %arg5[%c0_56, %c0_57] : memref<1x128xf32, #tpu.memory_space<vmem>>, vector<1x128xf32>
    %52 = vector.broadcast %51 : vector<1x128xf32> to vector<32x128xf32>
    %53 = arith.addf %50, %52 : vector<32x128xf32>
    %54 = arith.addf %53, %6 : vector<32x128xf32>
    %cst_58 = arith.constant 0.000000e+00 : f32
    %55 = vector.broadcast %cst_58 : f32 to vector<32x128xf32>
    %56 = arith.maximumf %54, %55 : vector<32x128xf32>
    %c0_59 = arith.constant 0 : index
    %c0_60 = arith.constant 0 : index
    %57 = vector.load %arg6[%c0_59, %c0_60] : memref<32x128xf32, #tpu.memory_space<vmem>>, vector<32x128xf32>
    tpu.vector_store %arg6[%c0_59, %c0_60], %56 {strides = array<i32>} : memref<32x128xf32, #tpu.memory_space<vmem>>, vector<32x128xf32>,
    return
  }
  func.func @transform_0(%arg0: i32) -> (i32, i32, i32) {
    %c0_i32 = arith.constant 0 : i32
    %c0_i32_0 = arith.constant 0 : i32
    %c0_i32_1 = arith.constant 0 : i32
    return %arg0, %c0_i32, %c0_i32_0 : i32, i32, i32
  }
  func.func @transform_1(%arg0: i32) -> (i32, i32, i32) {
    %c0_i32 = arith.constant 0 : i32
    %c0_i32_0 = arith.constant 0 : i32
    %c0_i32_1 = arith.constant 0 : i32
    %c0_i32_2 = arith.constant 0 : i32
    return %c0_i32, %c0_i32_0, %c0_i32_1 : i32, i32, i32
  }
  func.func @transform_2(%arg0: i32) -> (i32, i32) {
    %c0_i32 = arith.constant 0 : i32
    %c0_i32_0 = arith.constant 0 : i32
    %c0_i32_1 = arith.constant 0 : i32
    return %c0_i32, %c0_i32_0 : i32, i32
  }
  func.func @transform_3(%arg0: i32) -> (i32, i32, i32) {
    %c0_i32 = arith.constant 0 : i32
    %c0_i32_0 = arith.constant 0 : i32
    %c0_i32_1 = arith.constant 0 : i32
    %c0_i32_2 = arith.constant 0 : i32
    return %c0_i32, %c0_i32_0, %c0_i32_1 : i32, i32, i32
  }
  func.func @transform_4(%arg0: i32) -> (i32, i32) {
    %c0_i32 = arith.constant 0 : i32
    %c0_i32_0 = arith.constant 0 : i32
    %c0_i32_1 = arith.constant 0 : i32
    return %c0_i32, %c0_i32_0 : i32, i32
  }
  func.func @transform_5(%arg0: i32) -> (i32, i32) {
    %c0_i32 = arith.constant 0 : i32
    %c0_i32_0 = arith.constant 0 : i32
    return %arg0, %c0_i32 : i32, i32
  }
}

</mosaic_0001>

<bundles_post_ra>
// kernel: tpu_custom_call.1
= control target key start
LH: loop header
LB: loop body
LE: loop exit
PB: predicated region body
PF: predicated region fallthrough
CT: control target
= control target key end

     0   :  { %10 = vsyncpa [#allocation5], 0  ;;  %s1379_s0 = inlined_call_operand.hbm [shape: f32[2,16,128], index: 0, kind: input, shape index: {}]   ;;  %s1380_s1 = inlined_call_operand.hbm [shape: bf16[3,128,128], index: 1, kind: input, shape index: {}]   ;;  %s1381_s2 = inlined_call_operand.vmem [shape: f32[1,128], index: 2, kind: input, shape index: {}]   ;;  %s1382_s3 = inlined_call_operand.hbm [shape: bf16[3,128,128], index: 3, kind: input, shape index: {}]   ;;  %s1383_s4 = inlined_call_operand.vmem [shape: f32[1,128], index: 4, kind: input, shape index: {}]   ;;  %s1384_s5 = inlined_call_operand.hbm [shape: f32[32,128], index: 5, kind: output, shape index: {}]  }
   0x1   :  { %11 = vsyncpa [#allocation8], 0 }
   0x2   :  { %12 = vsyncpa [#allocation6], 0  ;;  %s1254_s18 = smov [#allocation7]   ;;  %s1160_s22 = scalar_lea.hbm %s1380_s1, 3072 }
   0x3   :  { %s30_s19 = sshll.u32 %s1254_s18, 4  ;;  %p1161_p0 = scmp.ne.s32.totalorder %s1380_s1, %s1160_s22  ;;  %s31_s19 = int_to_ptr.vmem [resolvable:$true] %s30_s19 }
   0x4   :  { %p1164_p1 = scmp.lt.u32.totalorder %s1160_s22, %s1380_s1 }
   0x6   :  { %p1166_p2 = pnand %p1164_p1, %p1161_p0 }
   0x8   :  { %1169 = shalt.err (!%p1166_p2)
}
   0x9   :  { %s1170_s27 = scalar_lea.vmem %s31_s19, 3072  ;;  %p1175_p4 = scmp.lt.s32.totalorder %s31_s19, %s31_s19 }
   0xa   :  { %p1171_p3 = scmp.ne.s32.totalorder %s31_s19, %s1170_s27  ;;  %p1176_p5 = scmp.lt.s32.totalorder %s1170_s27, %s1170_s27 }
   0xc   :  { %p1177_p6 = por %p1176_p5, %p1175_p4 }
   0xe   :  { %p1178_p7 = pnand %p1177_p6, %p1171_p3 }
  0x10   :  { %1181 = shalt.err (!%p1178_p7)
}
  0x11   :  { %s1255_s28 = smov 64   ;;  %s1256_s29 = smov 4  }
  0x12   :  { %36 = dma.hbm_to_vmem [thread:$0]  %s1380_s1, 3072, %s31_s19, [#allocation8], %s1255_s28, %s1255_s28, %s1256_s29  }
  0x13   :  { %s1257_s7 = smov [#allocation4]   ;;  %s1182_s11 = scalar_lea.hbm %s1379_s0, 512 }
  0x14   :  { %s18_s8 = sshll.u32 %s1257_s7, 4  ;;  %p1183_p8 = scmp.ne.s32.totalorder %s1379_s0, %s1182_s11  ;;  %s19_s8 = int_to_ptr.vmem [resolvable:$true] %s18_s8 }
  0x15   :  { %p1186_p9 = scmp.lt.u32.totalorder %s1182_s11, %s1379_s0 }
  0x17   :  { %p1188_p10 = pnand %p1186_p9, %p1183_p8 }
  0x19   :  { %1191 = shalt.err (!%p1188_p10)
}
  0x1a   :  { %s1192_s16 = scalar_lea.vmem %s19_s8, 512  ;;  %p1197_p12 = scmp.lt.s32.totalorder %s19_s8, %s19_s8 }
  0x1b   :  { %p1193_p11 = scmp.ne.s32.totalorder %s19_s8, %s1192_s16  ;;  %p1198_p13 = scmp.lt.s32.totalorder %s1192_s16, %s1192_s16 }
  0x1d   :  { %p1199_p0 = por %p1198_p13, %p1197_p12 }
  0x1f   :  { %p1200_p1 = pnand %p1199_p0, %p1193_p11 }
  0x21   :  { %1203 = shalt.err (!%p1200_p1)
}
  0x22   :  { %s1258_s1 = smov 128   ;;  %s1259_s17 = smov 8  }
  0x23   :  { %24 = dma.hbm_to_vmem [thread:$0]  %s1379_s0, 512, %s19_s8, [#allocation5], %s1258_s1, %s1258_s1, %s1259_s17  }
  0x24   :  { %s1260_s20 = smov [#allocation9]   ;;  %s1204_s24 = scalar_lea.hbm %s1382_s3, 3072 }
  0x25   :  { %s44_s21 = sshll.u32 %s1260_s20, 4  ;;  %p1205_p2 = scmp.ne.s32.totalorder %s1382_s3, %s1204_s24  ;;  %s45_s21 = int_to_ptr.vmem [resolvable:$true] %s44_s21 }
  0x26   :  { %p1208_p3 = scmp.lt.u32.totalorder %s1204_s24, %s1382_s3 }
  0x28   :  { %p1210_p4 = pnand %p1208_p3, %p1205_p2 }
  0x2a   :  { %1213 = shalt.err (!%p1210_p4)
}
  0x2b   :  { %s1214_s6 = scalar_lea.vmem %s45_s21, 3072  ;;  %p1219_p6 = scmp.lt.s32.totalorder %s45_s21, %s45_s21 }
  0x2c   :  { %p1215_p5 = scmp.ne.s32.totalorder %s45_s21, %s1214_s6  ;;  %p1220_p7 = scmp.lt.s32.totalorder %s1214_s6, %s1214_s6 }
  0x2e   :  { %p1221_p8 = por %p1220_p7, %p1219_p6 }
  0x30   :  { %p1222_p9 = pnand %p1221_p8, %p1215_p5 }
  0x32   :  { %1225 = shalt.err (!%p1222_p9)
}
  0x33   :  { %50 = dma.hbm_to_vmem [thread:$0]  %s1382_s3, 3072, %s45_s21, [#allocation8], %s1255_s28, %s1255_s28, %s1256_s29  }
  0x34   :  { %1248 = dma.done.wait [#allocation5], 512  }
  0x35   :  { %1249 = vsyncadd [#allocation5], 4294966784 }
  0x36   :  { %1250 = dma.done.wait [#allocation8], 6144  }
  0x37   :  { %1251 = vsyncadd [#allocation8], 4294961152  ;;  %v1261_v0 = vmov 0.0   ;;  %v1112_v1 = vld [vmem:[#allocation7] sm:$0xff]   ;;  %v1113_v2 = vld [vmem:[#allocation7 + $0x8] sm:$0xff]   ;;  %s1262_s8 = smov [#allocation10]  }
  0x38   :  { %63 = vst [vmem:[#allocation2] sm:$0x1] %v1261_v0  ;;  %64 = vst [vmem:[#allocation2 + $0x18] sm:$0x1] %v1261_v0  ;;  %967 = vmatprep.subr.bf16.mxu0 %v1112_v1  ;;  %v1114_v3 = vld [vmem:[#allocation7 + $0x10] sm:$0xff]   ;;  %v1115_v4 = vld [vmem:[#allocation7 + $0x18] sm:$0xff]  }
  0x39   :  { %65 = vst [vmem:[#allocation2 + $0x11] sm:$0x1] %v1261_v0  ;;  %66 = vst [vmem:[#allocation2 + $0x29] sm:$0x1] %v1261_v0  ;;  %968 = vmatpush3.bf16.msra.mxu0 %v1112_v1  ;;  %v1338_v5 = vld [vmem:[#allocation4] sm:$0xff]  ;;  %v1340_v6 = vld [vmem:[#allocation4 + $0x8] sm:$0xff] }
  0x3a   :  { %67 = vst [vmem:[#allocation3] sm:$0x1] %v1261_v0  ;;  %68 = vst [vmem:[#allocation3 + $0x18] sm:$0x1] %v1261_v0  ;;  %969 = vmatprep.subr.bf16.mxu0 %v1113_v2  ;;  %v1344_v7 = vld [vmem:[#allocation4 + $0x10] sm:$0xff]  ;;  %v1346_v8 = vld [vmem:[#allocation4 + $0x18] sm:$0xff]  ;;  %v79_v23 = vpack.c.bf16 %v1340_v6, %v1338_v5 }
  0x3b   :  { %69 = vst [vmem:[#allocation3 + $0x11] sm:$0x1] %v1261_v0  ;;  %70 = vst [vmem:[#allocation3 + $0x29] sm:$0x1] %v1261_v0  ;;  %v1116_v9 = vld [vmem:[#allocation7 + $0x20] sm:$0xff]   ;;  %v1117_v10 = vld [vmem:[#allocation7 + $0x28] sm:$0xff]   ;;  %v80_v35 = vpack.c.bf16 %v1346_v8, %v1344_v7 }
  0x3c   :  { %75 = vst [vmem:[#allocation2 + $0x1] sm:$0xff] %v1338_v5  ;;  %76 = vst [vmem:[#allocation2 + $0x9] sm:$0xff] %v1340_v6  ;;  %v1118_v14 = vld [vmem:[#allocation7 + $0x30] sm:$0xff]   ;;  %v1119_v15 = vld [vmem:[#allocation7 + $0x38] sm:$0xff]   ;;  %s844_s9 = sshll.u32 %s1262_s8, 4  ;;  %s845_s9 = int_to_ptr.vmem [resolvable:$true] %s844_s9 }
  0x3d   :  { %970 = vmatpush3.bf16.msra.mxu0 %v1113_v2  ;;  %77 = vst [vmem:[#allocation2 + $0x19] sm:$0xff] %v1344_v7  ;;  %78 = vst [vmem:[#allocation2 + $0x21] sm:$0xff] %v1346_v8  ;;  %v1120_v16 = vld [vmem:[#allocation7 + $0x40] sm:$0xff]   ;;  %v1137_v20 = vld [vmem:[#allocation9 + $0x8] sm:$0xff]   ;;  %p1231_p11 = scmp.lt.s32.totalorder %s845_s9, %s845_s9 }
  0x3e   :  { %971 = vmatprep.subr.bf16.mxu0 %v1114_v3  ;;  %v1136_v19 = vld [vmem:[#allocation9] sm:$0xff]   ;;  %v1121_v22 = vld [vmem:[#allocation7 + $0x48] sm:$0xff]   ;;  %v1138_v24 = vld [vmem:[#allocation9 + $0x10] sm:$0xff]  }
  0x3f   :  { %1027 = vmatprep.subr.bf16.mxu1 %v1136_v19  ;;  %v1122_v25 = vld [vmem:[#allocation7 + $0x50] sm:$0xff]   ;;  %v1139_v26 = vld [vmem:[#allocation9 + $0x18] sm:$0xff]   ;;  %v1124_v28 = vld [vmem:[#allocation7 + $0x60] sm:$0xff]  }
  0x40   :  { %1028 = vmatpush3.bf16.msra.mxu1 %v1136_v19  ;;  %v1123_v27 = vld [vmem:[#allocation7 + $0x58] sm:$0xff]   ;;  %v1125_v29 = vld [vmem:[#allocation7 + $0x68] sm:$0xff]   ;;  %v1126_v30 = vld [vmem:[#allocation7 + $0x70] sm:$0xff]  }
  0x41   :  { %972 = vmatpush3.bf16.msra.mxu0 %v1114_v3  ;;  %1029 = vmatprep.subr.bf16.mxu1 %v1137_v20  ;;  %v1127_v31 = vld [vmem:[#allocation7 + $0x78] sm:$0xff]   ;;  %v1128_v32 = vld [vmem:[#allocation7 + $0x80] sm:$0xff]   ;;  %v1129_v37 = vld [vmem:[#allocation7 + $0x88] sm:$0xff]  }
  0x42   :  { %973 = vmatprep.subr.bf16.mxu0 %v1115_v4  ;;  %v1130_v38 = vld [vmem:[#allocation7 + $0x90] sm:$0xff]   ;;  %v1131_v39 = vld [vmem:[#allocation7 + $0x98] sm:$0xff]   ;;  %v1132_v40 = vld [vmem:[#allocation7 + $0xa0] sm:$0xff]  }
  0x43   :  { %v98_v11 = vld [vmem:[#allocation2] sm:$0xff]  ;;  %v99_v12 = vld [vmem:[#allocation2 + $0x8] sm:$0xff]  ;;  %v1134_v42 = vld [vmem:[#allocation7 + $0xb0] sm:$0xff]  }
  0x44   :  { %v102_v13 = vpack.c.bf16 %v99_v12, %v98_v11  ;;  %v100_v17 = vld [vmem:[#allocation2 + $0x18] sm:$0xff]  ;;  %v101_v18 = vld [vmem:[#allocation2 + $0x20] sm:$0xff]  ;;  %1030 = vmatpush3.bf16.msra.mxu1 %v1137_v20  ;;  %v315_v34 = vld [vmem:[#allocation2 + $0xa] sm:$0xff] }
  0x45   :  { %974 = vmatpush3.bf16.msra.mxu0 %v1115_v4  ;;  %v103_v21 = vpack.c.bf16 %v101_v18, %v100_v17  ;;  %1031 = vmatprep.subr.bf16.mxu1 %v1138_v24  ;;  %v314_v33 = vld [vmem:[#allocation2 + $0x2] sm:$0xff]  ;;  %v1135_v43 = vld [vmem:[#allocation7 + $0xb8] sm:$0xff]   ;;  %v1142_v49 = vld [vmem:[#allocation9 + $0x30] sm:$0xff]  }
  0x46   :  { %975 = vmatprep.subr.bf16.mxu0 %v1116_v9  ;;  %983 = vmatprep.mubr.bf16.mxu0 %v102_v13  ;;  %v318_v36 = vpack.c.bf16 %v315_v34, %v314_v33  ;;  %v1133_v41 = vld [vmem:[#allocation7 + $0xa8] sm:$0xff]   ;;  %v316_v44 = vld [vmem:[#allocation2 + $0x1a] sm:$0xff]  ;;  %v1150_v18 = vld [vmem:[#allocation9 + $0x70] sm:$0xff]  }
  0x47   :  { %v317_v45 = vld [vmem:[#allocation2 + $0x22] sm:$0xff]  ;;  %v1143_v50 = vld [vmem:[#allocation9 + $0x38] sm:$0xff]   ;;  %v881_v52 = vld [vmem:[%s1381_s2] ss:$0 sm:$0xff] }
  0x48   :  { %1032 = vmatpush3.bf16.msra.mxu1 %v1138_v24  ;;  %v319_v46 = vpack.c.bf16 %v317_v45, %v316_v44  ;;  %v1140_v47 = vld [vmem:[#allocation9 + $0x20] sm:$0xff]   ;;  %v1141_v48 = vld [vmem:[#allocation9 + $0x28] sm:$0xff]   ;;  %v1151_v19 = vld [vmem:[#allocation9 + $0x78] sm:$0xff]  }
  0x49   :  { %976 = vmatpush3.bf16.msra.mxu0 %v1116_v9  ;;  %1033 = vmatprep.subr.bf16.mxu1 %v1139_v26  ;;  %v1144_v51 = vld [vmem:[#allocation9 + $0x40] sm:$0xff]   ;;  %v1145_v13 = vld [vmem:[#allocation9 + $0x48] sm:$0xff]  }
  0x4a   :  { %977 = vmatprep.subr.bf16.mxu0 %v1117_v10  ;;  %v1149_v17 = vld [vmem:[#allocation9 + $0x68] sm:$0xff]   ;;  %v1152_v20 = vld [vmem:[#allocation9 + $0x80] sm:$0xff]  }
  0x4b   :  { %v906_v34 = vld [vmem:[%s1383_s4] ss:$0 sm:$0xff]  ;;  %s1226_s4 = scalar_lea.vmem %s845_s9, 512 }
  0x4c   :  { %1034 = vmatpush3.bf16.msra.mxu1 %v1139_v26  ;;  %v1155_v26 = vld [vmem:[#allocation9 + $0x98] sm:$0xff]   ;;  %p1227_p10 = scmp.ne.s32.totalorder %s845_s9, %s1226_s4  ;;  %p1232_p12 = scmp.lt.s32.totalorder %s1226_s4, %s1226_s4 }
  0x4d   :  { %978 = vmatpush3.bf16.msra.mxu0 %v1117_v10  ;;  %1035 = vmatprep.subr.bf16.mxu1 %v1140_v47 }
  0x4e   :  { %979 = vmatprep.subr.bf16.mxu0 %v1118_v14  ;;  %p1233_p13 = por %p1232_p12, %p1231_p11 }
  0x50   :  { %1036 = vmatpush3.bf16.msra.mxu1 %v1140_v47  ;;  %p1234_p0 = pnand %p1233_p13, %p1227_p10 }
  0x51   :  { %980 = vmatpush3.bf16.msra.mxu0 %v1118_v14  ;;  %1037 = vmatprep.subr.bf16.mxu1 %v1141_v48  ;;  %v1146_v14 = vld [vmem:[#allocation9 + $0x50] sm:$0xff]  }
  0x52   :  { %981 = vmatprep.subr.bf16.mxu0 %v1119_v15 }
  0x54   :  { %1038 = vmatpush3.bf16.msra.mxu1 %v1141_v48 }
  0x55   :  { %982 = vmatpush3.bf16.msra.mxu0 %v1119_v15  ;;  %1039 = vmatprep.subr.bf16.mxu1 %v1142_v49  ;;  %v1147_v15 = vld [vmem:[#allocation9 + $0x58] sm:$0xff]  }
  0x56   :  { %987 = vmatprep.subr.bf16.mxu0 %v1120_v16 }
  0x58   :  { %984 = vmatmul.mubr.bf16.vlgmr.msra.gmra.mrb[0].mxu0 %v103_v21  ;;  %1040 = vmatpush3.bf16.msra.mxu1 %v1142_v49 }
  0x59   :  { %988 = vmatpush3.bf16.msra.mxu0 %v1120_v16  ;;  %1003 = vmatprep.mubr.bf16.mxu0 %v79_v23  ;;  %v1148_v16 = vld [vmem:[#allocation9 + $0x60] sm:$0xff]   ;;  %v1153_v23 = vld [vmem:[#allocation9 + $0x88] sm:$0xff]  }
  0x5a   :  { %989 = vmatprep.subr.bf16.mxu0 %v1121_v22  ;;  %1041 = vmatprep.subr.bf16.mxu1 %v1143_v50 }
  0x5c   :  { %1042 = vmatpush3.bf16.msra.mxu1 %v1143_v50 }
  0x5d   :  { %990 = vmatpush3.bf16.msra.mxu0 %v1121_v22  ;;  %1047 = vmatprep.subr.bf16.mxu1 %v1144_v51 }
  0x5e   :  { %991 = vmatprep.subr.bf16.mxu0 %v1122_v25 }
  0x61   :  { %992 = vmatpush3.bf16.msra.mxu0 %v1122_v25  ;;  %v1154_v25 = vld [vmem:[#allocation9 + $0x90] sm:$0xff]  }
  0x62   :  { %993 = vmatprep.subr.bf16.mxu0 %v1123_v27 }
  0x65   :  { %994 = vmatpush3.bf16.msra.mxu0 %v1123_v27  ;;  %v1156_v27 = vld [vmem:[#allocation9 + $0xa0] sm:$0xff]  }
  0x66   :  { %995 = vmatprep.subr.bf16.mxu0 %v1124_v28 }
  0x69   :  { %996 = vmatpush3.bf16.msra.mxu0 %v1124_v28  ;;  %v1157_v28 = vld [vmem:[#allocation9 + $0xa8] sm:$0xff]  }
  0x6a   :  { %997 = vmatprep.subr.bf16.mxu0 %v1125_v29 }
  0x6d   :  { %998 = vmatpush3.bf16.msra.mxu0 %v1125_v29  ;;  %v1158_v29 = vld [vmem:[#allocation9 + $0xb0] sm:$0xff]  }
  0x6e   :  { %999 = vmatprep.subr.bf16.mxu0 %v1126_v30 }
  0x71   :  { %1000 = vmatpush3.bf16.msra.mxu0 %v1126_v30  ;;  %v1159_v30 = vld [vmem:[#allocation9 + $0xb8] sm:$0xff]  }
  0x72   :  { %1001 = vmatprep.subr.bf16.mxu0 %v1127_v31 }
  0x75   :  { %1002 = vmatpush3.bf16.msra.mxu0 %v1127_v31 }
  0x76   :  { %1007 = vmatprep.subr.bf16.mxu0 %v1128_v32 }
  0x78   :  { %1004 = vmatmul.mubr.bf16.vlgmr.msra.gmra.mrb[0].mxu0 %v80_v35 }
  0x79   :  { %1008 = vmatpush3.bf16.msra.mxu0 %v1128_v32  ;;  %1023 = vmatprep.mubr.bf16.mxu0 %v318_v36 }
  0x7a   :  { %1009 = vmatprep.subr.bf16.mxu0 %v1129_v37 }
  0x7d   :  { %1010 = vmatpush3.bf16.msra.mxu0 %v1129_v37 }
  0x7e   :  { %1011 = vmatprep.subr.bf16.mxu0 %v1130_v38 }
  0x81   :  { %1012 = vmatpush3.bf16.msra.mxu0 %v1130_v38 }
  0x82   :  { %1013 = vmatprep.subr.bf16.mxu0 %v1131_v39 }
  0x85   :  { %1014 = vmatpush3.bf16.msra.mxu0 %v1131_v39 }
  0x86   :  { %1015 = vmatprep.subr.bf16.mxu0 %v1132_v40 }
  0x89   :  { %1016 = vmatpush3.bf16.msra.mxu0 %v1132_v40 }
  0x8a   :  { %1017 = vmatprep.subr.bf16.mxu0 %v1133_v41 }
  0x8d   :  { %1018 = vmatpush3.bf16.msra.mxu0 %v1133_v41 }
  0x8e   :  { %1019 = vmatprep.subr.bf16.mxu0 %v1134_v42 }
  0x91   :  { %1020 = vmatpush3.bf16.msra.mxu0 %v1134_v42 }
  0x92   :  { %1021 = vmatprep.subr.bf16.mxu0 %v1135_v43 }
  0x95   :  { %1022 = vmatpush3.bf16.msra.mxu0 %v1135_v43 }
  0x98   :  { %1024 = vmatmul.mubr.bf16.vlgmr.msra.gmra.mrb[0].mxu0 %v319_v46 }
 0x16b   :  { %v1025_v53 = vpop.f32.mrb[0].mxu0 }
 0x16c   :  { %v447_v54 = vadd.f32 %v1025_v53, %v881_v52  ;;  %v419_v55 = vpop.f32.mrb[1].mxu0 }
 0x16d   :  { %v445_v56 = vadd.f32 %v881_v52, %v419_v55  ;;  %v1026_v57 = vpop.f32.mrb[2].mxu0 }
 0x16e   :  { %v451_v58 = vmax.f32 %v447_v54, 0.0  ;;  %v448_v59 = vadd.f32 %v1026_v57, %v881_v52  ;;  %v422_v60 = vpop.f32.mrb[3].mxu0 }
 0x16f   :  { %v449_v61 = vmax.f32 %v445_v56, 0.0  ;;  %v446_v62 = vadd.f32 %v881_v52, %v422_v60 }
 0x170   :  { %455 = vst [vmem:[#allocation3 + $0x19] sm:$0xff] %v451_v58  ;;  %v452_v63 = vmax.f32 %v448_v59, 0.0 }
 0x171   :  { %453 = vst [vmem:[#allocation3 + $0x1] sm:$0xff] %v449_v61  ;;  %v450_v0 = vmax.f32 %v446_v62, 0.0 }
 0x172   :  { %456 = vst [vmem:[#allocation3 + $0x21] sm:$0xff] %v452_v63  ;;  %v458_v1 = vpack.c.bf16 %v452_v63, %v451_v58 }
 0x173   :  { %454 = vst [vmem:[#allocation3 + $0x9] sm:$0xff] %v450_v0  ;;  %v457_v2 = vpack.c.bf16 %v450_v0, %v449_v61 }
 0x177   :  { %v478_v11 = vld [vmem:[#allocation3 + $0x18] sm:$0xff] }
 0x178   :  { %v476_v4 = vld [vmem:[#allocation3] sm:$0xff] }
 0x179   :  { %v479_v3 = vld [vmem:[#allocation3 + $0x20] sm:$0xff] }
 0x17a   :  { %v477_v9 = vld [vmem:[#allocation3 + $0x8] sm:$0xff]  ;;  %v481_v12 = vpack.c.bf16 %v479_v3, %v478_v11  ;;  %v694_v31 = vld [vmem:[#allocation3 + $0x1a] sm:$0xff] }
 0x17b   :  { %v480_v10 = vpack.c.bf16 %v477_v9, %v476_v4  ;;  %v692_v21 = vld [vmem:[#allocation3 + $0x2] sm:$0xff]  ;;  %v693_v22 = vld [vmem:[#allocation3 + $0xa] sm:$0xff] }
 0x17c   :  { %v696_v24 = vpack.c.bf16 %v693_v22, %v692_v21  ;;  %v695_v32 = vld [vmem:[#allocation3 + $0x22] sm:$0xff] }
 0x17d   :  { %1043 = vmatprep.mubr.bf16.mxu1 %v480_v10  ;;  %v697_v33 = vpack.c.bf16 %v695_v32, %v694_v31 }
 0x17e   :  { %1044 = vmatmul.mubr.bf16.vlgmr.msra.gmra.mrb[0].mxu1 %v481_v12 }
 0x17f   :  { %1048 = vmatpush3.bf16.msra.mxu1 %v1144_v51  ;;  %1063 = vmatprep.mubr.bf16.mxu1 %v457_v2 }
 0x180   :  { %1049 = vmatprep.subr.bf16.mxu1 %v1145_v13 }
 0x183   :  { %1050 = vmatpush3.bf16.msra.mxu1 %v1145_v13 }
 0x184   :  { %1051 = vmatprep.subr.bf16.mxu1 %v1146_v14 }
 0x187   :  { %1052 = vmatpush3.bf16.msra.mxu1 %v1146_v14 }
 0x188   :  { %1053 = vmatprep.subr.bf16.mxu1 %v1147_v15 }
 0x18b   :  { %1054 = vmatpush3.bf16.msra.mxu1 %v1147_v15 }
 0x18c   :  { %1055 = vmatprep.subr.bf16.mxu1 %v1148_v16 }
 0x18f   :  { %1056 = vmatpush3.bf16.msra.mxu1 %v1148_v16 }
 0x190   :  { %1057 = vmatprep.subr.bf16.mxu1 %v1149_v17 }
 0x193   :  { %1058 = vmatpush3.bf16.msra.mxu1 %v1149_v17 }
 0x194   :  { %1059 = vmatprep.subr.bf16.mxu1 %v1150_v18 }
 0x197   :  { %1060 = vmatpush3.bf16.msra.mxu1 %v1150_v18 }
 0x198   :  { %1061 = vmatprep.subr.bf16.mxu1 %v1151_v19 }
 0x19b   :  { %1062 = vmatpush3.bf16.msra.mxu1 %v1151_v19 }
 0x19c   :  { %1067 = vmatprep.subr.bf16.mxu1 %v1152_v20 }
 0x19e   :  { %1064 = vmatmul.mubr.bf16.vlgmr.msra.gmra.mrb[0].mxu1 %v458_v1 }
 0x19f   :  { %1068 = vmatpush3.bf16.msra.mxu1 %v1152_v20  ;;  %1083 = vmatprep.mubr.bf16.mxu1 %v696_v24 }
 0x1a0   :  { %1069 = vmatprep.subr.bf16.mxu1 %v1153_v23 }
 0x1a3   :  { %1070 = vmatpush3.bf16.msra.mxu1 %v1153_v23 }
 0x1a4   :  { %1071 = vmatprep.subr.bf16.mxu1 %v1154_v25 }
 0x1a7   :  { %1072 = vmatpush3.bf16.msra.mxu1 %v1154_v25 }
 0x1a8   :  { %1073 = vmatprep.subr.bf16.mxu1 %v1155_v26 }
 0x1ab   :  { %1074 = vmatpush3.bf16.msra.mxu1 %v1155_v26 }
 0x1ac   :  { %1075 = vmatprep.subr.bf16.mxu1 %v1156_v27 }
 0x1af   :  { %1076 = vmatpush3.bf16.msra.mxu1 %v1156_v27 }
 0x1b0   :  { %1077 = vmatprep.subr.bf16.mxu1 %v1157_v28 }
 0x1b3   :  { %1078 = vmatpush3.bf16.msra.mxu1 %v1157_v28 }
 0x1b4   :  { %1079 = vmatprep.subr.bf16.mxu1 %v1158_v29 }
 0x1b7   :  { %1080 = vmatpush3.bf16.msra.mxu1 %v1158_v29 }
 0x1b8   :  { %1081 = vmatprep.subr.bf16.mxu1 %v1159_v30 }
 0x1bb   :  { %1082 = vmatpush3.bf16.msra.mxu1 %v1159_v30 }
 0x1be   :  { %1084 = vmatmul.mubr.bf16.vlgmr.msra.gmra.mrb[0].mxu1 %v697_v33 }
 0x291   :  { %v1085_v35 = vpop.f32.mrb[0].mxu1 }
 0x292   :  { %v825_v36 = vadd.f32 %v1085_v35, %v906_v34  ;;  %v797_v37 = vpop.f32.mrb[1].mxu1 }
 0x293   :  { %v823_v38 = vadd.f32 %v906_v34, %v797_v37  ;;  %v1086_v39 = vpop.f32.mrb[2].mxu1 }
 0x294   :  { %v829_v40 = vadd.f32 %v825_v36, %v1344_v7  ;;  %v826_v41 = vadd.f32 %v1086_v39, %v906_v34  ;;  %v800_v42 = vpop.f32.mrb[3].mxu1 }
 0x295   :  { %v827_v43 = vadd.f32 %v823_v38, %v1338_v5  ;;  %v824_v44 = vadd.f32 %v906_v34, %v800_v42 }
 0x296   :  { %v833_v45 = vmax.f32 %v829_v40, 0.0  ;;  %v830_v46 = vadd.f32 %v826_v41, %v1346_v8 }
 0x297   :  { %v831_v47 = vmax.f32 %v827_v43, 0.0  ;;  %v828_v48 = vadd.f32 %v824_v44, %v1340_v6 }
 0x298   :  { %837 = vst [vmem:[#allocation10 + $0x10] sm:$0xff] %v833_v45  ;;  %v834_v49 = vmax.f32 %v830_v46, 0.0 }
 0x299   :  { %835 = vst [vmem:[#allocation10] sm:$0xff] %v831_v47  ;;  %v832_v50 = vmax.f32 %v828_v48, 0.0 }
 0x29a   :  { %838 = vst [vmem:[#allocation10 + $0x18] sm:$0xff] %v834_v49 }
 0x29b   :  { %836 = vst [vmem:[#allocation10 + $0x8] sm:$0xff] %v832_v50 }
 0x29c   :  { %1237 = shalt.err (!%p1234_p0)
}
 0x29d   :  { %s1238_s12 = scalar_lea.hbm %s1384_s5, 512 }
 0x29e   :  { %p1239_p1 = scmp.ne.s32.totalorder %s1384_s5, %s1238_s12  ;;  %p1242_p2 = scmp.lt.u32.totalorder %s1238_s12, %s1384_s5 }
 0x2a0   :  { %p1244_p3 = pnand %p1242_p2, %p1239_p1 }
 0x2a2   :  { %1247 = shalt.err (!%p1244_p3)
}
 0x2a3   :  { %850 = dma.vmem_to_hbm [thread:$0]  %s845_s9, 512, %s1384_s5, [#allocation6], %s1258_s1, %s1258_s1, %s1259_s17  }
 0x2a4   :  { %1252 = dma.done.wait [#allocation6], 512  }
 0x2a5   :  { %1253 = vsyncadd [#allocation6], 4294966784 }
 0x2a6   :  { %854 = vsyncpa [#allocation5], 1 }
 0x2a7   :  { %855 = vsyncpa [#allocation8], 1 }
 0x2a8   :  { %856 = vsyncpa [#allocation6], 1 }

</bundles_post_ra>
